<compile_context>
chip_gen: v6e
topology: v6e:2x2x1
jax: 0.10.0
libtpu: 0.0.40
codegen_flags: <defaults>
</compile_context>

<pallas_src>
import functools

import jax
import jax.numpy as jnp
from jax.experimental import pallas as pl
from jax.experimental.pallas import tpu as pltpu


def _round_up(x, m):
    return (x + m - 1) // m * m


# --------------------------- fused stacked-LSTM kernel ---------------------------
def _make_stacked_lstm_kernel(num_layers, hp):
    """Kernel body for grid=(T,).  Layer loop is unrolled (num_layers is small)."""

    def kernel(*refs):
        x_ref = refs[0]                                   # (1, Bp, Ep)  x[t]
        h0_ref = refs[1]                                  # (L, Bp, Hp)  initial h
        c0_ref = refs[2]                                  # (L, Bp, Hp)  initial c
        w_refs = refs[3:3 + num_layers]                   # (K_l, 4*Hp)  fused [x|h] weights
        b_refs = refs[3 + num_layers:3 + 2 * num_layers]  # (1, 4*Hp)
        out_ref, hx_ref, cx_ref = refs[3 + 2 * num_layers:]
        # out_ref: (1, Bp, Hp) per-step top-layer output (pipelined over t).
        # hx_ref/cx_ref: (L, Bp, Hp) constant-index outputs -> stay resident in VMEM
        # across grid steps and double as the recurrent state.

        t = pl.program_id(0)

        @pl.when(t == 0)
        def _init_state():
            hx_ref[...] = h0_ref[...]
            cx_ref[...] = c0_ref[...]

        layer_in = x_ref[0]                               # [Bp, Ep]
        for layer in range(num_layers):
            h_prev = hx_ref[layer]                        # [Bp, Hp]
            c_prev = cx_ref[layer]
            # Single MXU push per layer: gates = [x | h] @ W_cat + b.
            xin = jnp.concatenate([layer_in, h_prev], axis=-1)
            gates = (jnp.dot(xin, w_refs[layer][...],
                             preferred_element_type=jnp.float32)
                     + b_refs[layer][...])
            # Each gate occupies one 128-lane slot -> slices are tile-aligned views.
            i_g = jax.nn.sigmoid(gates[:, 0 * hp:1 * hp])
            f_g = jax.nn.sigmoid(gates[:, 1 * hp:2 * hp])
            g_g = jnp.tanh(gates[:, 2 * hp:3 * hp])
            o_g = jax.nn.sigmoid(gates[:, 3 * hp:4 * hp])
            c_new = f_g * c_prev + i_g * g_g
            h_new = o_g * jnp.tanh(c_new)
            hx_ref[layer] = h_new
            cx_ref[layer] = c_new
            layer_in = h_new

        out_ref[0] = layer_in                             # top-layer h at step t

    return kernel


# -------------------- one-time weight packing (PyTorch -> fused) -------------------
def pack_params(params, input_size, hidden_size):
    """Pack per-layer torch.nn.LSTMCell weights into fused, lane-padded matrices.

    params[l] = {'w_ih': [4H, in_l], 'w_hh': [4H, H], 'b_ih': [4H], 'b_hh': [4H]}
    with PyTorch gate order (i, f, g, o).

    Returns (w_packed, b_packed):
      w_packed[l]: [in_pad_l + Hp, 4*Hp]   rows = [x | h], gate g in lanes [g*Hp, g*Hp+H)
      b_packed[l]: [1, 4*Hp]               b_ih + b_hh, same gate layout
    Zero padding is exact: padded hidden units stay identically zero.
    """
    H = hidden_size
    Hp = _round_up(H, 128)
    Ep = _round_up(input_size, 128)
    w_packed, b_packed = [], []
    for l, p in enumerate(params):
        in_l = p['w_ih'].shape[1]
        in_p = Ep if l == 0 else Hp
        w = jnp.zeros((in_p + Hp, 4 * Hp), jnp.float32)
        b = jnp.zeros((1, 4 * Hp), jnp.float32)
        bsum = p['b_ih'] + p['b_hh']
        for g in range(4):
            w = w.at[:in_l, g * Hp:g * Hp + H].set(p['w_ih'][g * H:(g + 1) * H, :].T)
            w = w.at[in_p:in_p + H, g * Hp:g * Hp + H].set(p['w_hh'][g * H:(g + 1) * H, :].T)
            b = b.at[0, g * Hp:g * Hp + H].set(bsum[g * H:(g + 1) * H])
        w_packed.append(w)
        b_packed.append(b)
    return tuple(w_packed), tuple(b_packed)


# ----------------------------------- forward ---------------------------------------
def lstm_forward(x, state, w_packed, b_packed, hidden_size):
    """Pallas forward matching LSTMmodel.forward (dense-tensor branch).

    x:      [T, B, input_size] float32
    state:  (hx, cx), each [num_layers, B, hidden_size] float32
    Returns (output [T, B, H], (hx_T, cx_T) each [num_layers, B, H]).
    """
    # TODO(synk): PackedSequence branch (data-dependent batch_sizes, hard-coded
    # range(20) loop) is not implemented; only the dense-tensor branch is.
    hx, cx = state
    T, B, E = x.shape
    L = hx.shape[0]
    H = hidden_size
    Bp = _round_up(B, 8)       # fill sublanes
    Ep = _round_up(E, 128)     # lane-align features
    Hp = _round_up(H, 128)     # lane-align hidden / gate slots

    xp = jnp.zeros((T, Bp, Ep), jnp.float32).at[:, :B, :E].set(x)
    h0 = jnp.zeros((L, Bp, Hp), jnp.float32).at[:, :B, :H].set(hx)
    c0 = jnp.zeros((L, Bp, Hp), jnp.float32).at[:, :B, :H].set(cx)

    kernel = _make_stacked_lstm_kernel(L, Hp)

    const3 = lambda t: (0, 0, 0)
    const2 = lambda t: (0, 0)
    in_specs = (
        [pl.BlockSpec((1, Bp, Ep), lambda t: (t, 0, 0))]            # x[t] streamed
        + [pl.BlockSpec((L, Bp, Hp), const3)] * 2                   # h0, c0 (resident)
        + [pl.BlockSpec(w.shape, const2) for w in w_packed]         # weights (resident)
        + [pl.BlockSpec(b.shape, const2) for b in b_packed]         # biases  (resident)
    )
    out_shape = (
        jax.ShapeDtypeStruct((T, Bp, Hp), jnp.float32),             # per-step output
        jax.ShapeDtypeStruct((L, Bp, Hp), jnp.float32),             # final hx
        jax.ShapeDtypeStruct((L, Bp, Hp), jnp.float32),             # final cx
    )
    out_specs = (
        pl.BlockSpec((1, Bp, Hp), lambda t: (t, 0, 0)),
        pl.BlockSpec((L, Bp, Hp), const3),                          # resident accumulators
        pl.BlockSpec((L, Bp, Hp), const3),
    )

    out_p, hx_p, cx_p = pl.pallas_call(
        kernel,
        grid=(T,),
        in_specs=in_specs,
        out_specs=out_specs,
        out_shape=out_shape,
        compiler_params=pltpu.CompilerParams(
            dimension_semantics=("arbitrary",)),                    # time recurrence
    )(xp, h0, c0, *w_packed, *b_packed)

    return out_p[:, :B, :H], (hx_p[:, :B, :H], cx_p[:, :B, :H])


# ------------------------------- plain-JAX reference -------------------------------
def lstm_forward_ref(x, state, params):
    hx, cx = state
    L, _, H = hx.shape
    hx = [hx[l] for l in range(L)]
    cx = [cx[l] for l in range(L)]
    outs = []
    for t in range(x.shape[0]):
        inp = x[t]
        for l in range(L):
            p = params[l]
            gates = inp @ p['w_ih'].T + p['b_ih'] + hx[l] @ p['w_hh'].T + p['b_hh']
            i = jax.nn.sigmoid(gates[:, 0 * H:1 * H])
            f = jax.nn.sigmoid(gates[:, 1 * H:2 * H])
            g = jnp.tanh(gates[:, 2 * H:3 * H])
            o = jax.nn.sigmoid(gates[:, 3 * H:4 * H])
            cx[l] = f * cx[l] + i * g
            hx[l] = o * jnp.tanh(cx[l])
            inp = hx[l]
        outs.append(inp)
    return jnp.stack(outs, 0), (jnp.stack(hx, 0), jnp.stack(cx, 0))


def init_params(key, input_size, hidden_size, num_layers):
    """Random weights in torch.nn.LSTMCell layout (gate order i, f, g, o)."""
    params = []
    bound = 1.0 / (hidden_size ** 0.5)
    keys = jax.random.split(key, num_layers * 4)
    for l in range(num_layers):
        in_l = input_size if l == 0 else hidden_size
        kw = keys[4 * l:4 * l + 4]
        params.append({
            'w_ih': jax.random.uniform(kw[0], (4 * hidden_size, in_l), jnp.float32, -bound, bound),
            'w_hh': jax.random.uniform(kw[1], (4 * hidden_size, hidden_size), jnp.float32, -bound, bound),
            'b_ih': jax.random.uniform(kw[2], (4 * hidden_size,), jnp.float32, -bound, bound),
            'b_hh': jax.random.uniform(kw[3], (4 * hidden_size,), jnp.float32, -bound, bound),
        })
    return params


if __name__ == "__main__":
    key = jax.random.PRNGKey(0)
    kx, kp = jax.random.split(key)

    T, B, E, H, L = 8, 2, 16, 32, 2       # seq=8, batch=2, input=16, hidden=32, 2 layers
    x = jax.random.normal(kx, (T, B, E), jnp.float32)
    hx0 = jnp.zeros((L, B, H), jnp.float32)
    cx0 = jnp.zeros((L, B, H), jnp.float32)

    params = init_params(kp, E, H, L)
    w_packed, b_packed = pack_params(params, E, H)      # one-time layout transform

    fwd = jax.jit(functools.partial(lstm_forward, hidden_size=H))
    out, (hx_T, cx_T) = fwd(x, (hx0, cx0), w_packed, b_packed)
    jax.block_until_ready((out, hx_T, cx_T))

    assert out.shape == (T, B, H), out.shape
    assert hx_T.shape == (L, B, H) and cx_T.shape == (L, B, H)

    # Correctness vs a plain-JAX transcription of the PyTorch forward.
    out_r, (hx_r, cx_r) = lstm_forward_ref(x, (hx0, cx0), params)
    for got, want in ((out, out_r), (hx_T, hx_r), (cx_T, cx_r)):
        assert jnp.allclose(got, want, atol=1e-3, rtol=1e-3), float(jnp.abs(got - want).max())

    print("KERNEL_OK")
</pallas_src>

<mosaic_0001>
module attributes {stable_mosaic.version = 11 : i64} {
  func.func @kernel(%arg0: i32, %arg1: memref<1x8x128xf32, #tpu.memory_space<vmem>>, %arg2: memref<2x8x128xf32, #tpu.memory_space<vmem>>, %arg3: memref<2x8x128xf32, #tpu.memory_space<vmem>>, %arg4: memref<256x512xf32, #tpu.memory_space<vmem>>, %arg5: memref<256x512xf32, #tpu.memory_space<vmem>>, %arg6: memref<1x512xf32, #tpu.memory_space<vmem>>, %arg7: memref<1x512xf32, #tpu.memory_space<vmem>>, %arg8: memref<1x8x128xf32, #tpu.memory_space<vmem>>, %arg9: memref<2x8x128xf32, #tpu.memory_space<vmem>>, %arg10: memref<2x8x128xf32, #tpu.memory_space<vmem>>) attributes {dimension_semantics = [#tpu.dimension_semantics<arbitrary>], iteration_bounds = array<i64: 8>, scalar_prefetch = 0 : i64, scratch_operands = 0 : i64, tpu.core_type = #tpu.core_type<tc>, window_params = [{transform_indices = @transform_0, window_bounds = array<i64: 1, 8, 128>}, {pipeline_mode = #tpu.pipeline_mode<synchronous>, transform_indices = @transform_1, window_bounds = array<i64: 2, 8, 128>}, {pipeline_mode = #tpu.pipeline_mode<synchronous>, transform_indices = @transform_2, window_bounds = array<i64: 2, 8, 128>}, {pipeline_mode = #tpu.pipeline_mode<synchronous>, transform_indices = @transform_3, window_bounds = array<i64: 256, 512>}, {pipeline_mode = #tpu.pipeline_mode<synchronous>, transform_indices = @transform_4, window_bounds = array<i64: 256, 512>}, {pipeline_mode = #tpu.pipeline_mode<synchronous>, transform_indices = @transform_5, window_bounds = array<i64: 1, 512>}, {pipeline_mode = #tpu.pipeline_mode<synchronous>, transform_indices = @transform_6, window_bounds = array<i64: 1, 512>}, {transform_indices = @transform_7, window_bounds = array<i64: 1, 8, 128>}, {pipeline_mode = #tpu.pipeline_mode<synchronous>, transform_indices = @transform_8, window_bounds = array<i64: 2, 8, 128>}, {pipeline_mode = #tpu.pipeline_mode<synchronous>, transform_indices = @transform_9, window_bounds = array<i64: 2, 8, 128>}]} {
    %c0_i32 = arith.constant 0 : i32
    %0 = arith.cmpi eq, %arg0, %c0_i32 : i32
    %1 = arith.extui %0 : i1 to i32
    %c0_i32_0 = arith.constant 0 : i32
    %2 = arith.cmpi ne, %1, %c0_i32_0 : i32
    scf.if %2 {
      %c0_44 = arith.constant 0 : index
      %c0_45 = arith.constant 0 : index
      %c0_46 = arith.constant 0 : index
      %90 = vector.load %arg2[%c0_44, %c0_45, %c0_46] : memref<2x8x128xf32, #tpu.memory_space<vmem>>, vector<2x8x128xf32>
      %c0_47 = arith.constant 0 : index
      %c0_48 = arith.constant 0 : index
      %c0_49 = arith.constant 0 : index
      %91 = vector.load %arg9[%c0_47, %c0_48, %c0_49] : memref<2x8x128xf32, #tpu.memory_space<vmem>>, vector<2x8x128xf32>
      tpu.vector_store %arg9[%c0_47, %c0_48, %c0_49], %90 {strides = array<i32>} : memref<2x8x128xf32, #tpu.memory_space<vmem>>, vector<2x8x128xf32>,
      %c0_50 = arith.constant 0 : index
      %c0_51 = arith.constant 0 : index
      %c0_52 = arith.constant 0 : index
      %92 = vector.load %arg3[%c0_50, %c0_51, %c0_52] : memref<2x8x128xf32, #tpu.memory_space<vmem>>, vector<2x8x128xf32>
      %c0_53 = arith.constant 0 : index
      %c0_54 = arith.constant 0 : index
      %c0_55 = arith.constant 0 : index
      %93 = vector.load %arg10[%c0_53, %c0_54, %c0_55] : memref<2x8x128xf32, #tpu.memory_space<vmem>>, vector<2x8x128xf32>
      tpu.vector_store %arg10[%c0_53, %c0_54, %c0_55], %92 {strides = array<i32>} : memref<2x8x128xf32, #tpu.memory_space<vmem>>, vector<2x8x128xf32>,
    } else {
    }
    %c0 = arith.constant 0 : index
    %c0_1 = arith.constant 0 : index
    %c0_2 = arith.constant 0 : index
    %3 = vector.load %arg1[%c0, %c0_1, %c0_2] : memref<1x8x128xf32, #tpu.memory_space<vmem>>, vector<1x8x128xf32>
    %4 = vector.shape_cast %3 : vector<1x8x128xf32> to vector<8x128xf32>
    %c0_3 = arith.constant 0 : index
    %c0_4 = arith.constant 0 : index
    %c0_5 = arith.constant 0 : index
    %5 = vector.load %arg9[%c0_3, %c0_4, %c0_5] : memref<2x8x128xf32, #tpu.memory_space<vmem>>, vector<1x8x128xf32>
    %6 = vector.shape_cast %5 : vector<1x8x128xf32> to vector<8x128xf32>
    %c0_6 = arith.constant 0 : index
    %c0_7 = arith.constant 0 : index
    %c0_8 = arith.constant 0 : index
    %7 = vector.load %arg10[%c0_6, %c0_7, %c0_8] : memref<2x8x128xf32, #tpu.memory_space<vmem>>, vector<1x8x128xf32>
    %8 = vector.shape_cast %7 : vector<1x8x128xf32> to vector<8x128xf32>
    %9 = tpu.concatenate %4, %6 in 1 : vector<8x128xf32>, vector<8x128xf32> -> vector<8x256xf32>
    %c0_9 = arith.constant 0 : index
    %c0_10 = arith.constant 0 : index
    %10 = vector.load %arg4[%c0_9, %c0_10] : memref<256x512xf32, #tpu.memory_space<vmem>>, vector<256x512xf32>
    %cst = arith.constant dense<0.000000e+00> : vector<8x512xf32>
    %11 = tpu.matmul %9, %10, %cst {dimension_numbers = #tpu.dot_dimension_numbers<[1], [0], [0], [1], [0, 0, 1, 1], [], []>} : vector<8x256xf32>, vector<256x512xf32>, vector<8x512xf32> -> vector<8x512xf32>
    %c0_11 = arith.constant 0 : index
    %c0_12 = arith.constant 0 : index
    %12 = vector.load %arg6[%c0_11, %c0_12] : memref<1x512xf32, #tpu.memory_space<vmem>>, vector<1x512xf32>
    %13 = vector.broadcast %12 : vector<1x512xf32> to vector<8x512xf32>
    %14 = arith.addf %11, %13 : vector<8x512xf32>
    %15 = vector.extract_strided_slice %14 {offsets = [0, 0], sizes = [8, 128], strides = [1, 1]} : vector<8x512xf32> to vector<8x128xf32>
    %16 = arith.negf %15 : vector<8x128xf32>
    %17 = math.exp %16 : vector<8x128xf32>
    %cst_13 = arith.constant 1.000000e+00 : f32
    %18 = vector.broadcast %cst_13 : f32 to vector<8x128xf32>
    %19 = arith.addf %18, %17 : vector<8x128xf32>
    %20 = arith.divf %18, %19 : vector<8x128xf32>
    %21 = vector.extract_strided_slice %14 {offsets = [0, 128], sizes = [8, 128], strides = [1, 1]} : vector<8x512xf32> to vector<8x128xf32>
    %22 = arith.negf %21 : vector<8x128xf32>
    %23 = math.exp %22 : vector<8x128xf32>
    %cst_14 = arith.constant 1.000000e+00 : f32
    %24 = vector.broadcast %cst_14 : f32 to vector<8x128xf32>
    %25 = arith.addf %24, %23 : vector<8x128xf32>
    %26 = arith.divf %24, %25 : vector<8x128xf32>
    %27 = vector.extract_strided_slice %14 {offsets = [0, 256], sizes = [8, 128], strides = [1, 1]} : vector<8x512xf32> to vector<8x128xf32>
    %28 = math.tanh %27 : vector<8x128xf32>
    %29 = vector.extract_strided_slice %14 {offsets = [0, 384], sizes = [8, 128], strides = [1, 1]} : vector<8x512xf32> to vector<8x128xf32>
    %30 = arith.negf %29 : vector<8x128xf32>
    %31 = math.exp %30 : vector<8x128xf32>
    %cst_15 = arith.constant 1.000000e+00 : f32
    %32 = vector.broadcast %cst_15 : f32 to vector<8x128xf32>
    %33 = arith.addf %32, %31 : vector<8x128xf32>
    %34 = arith.divf %32, %33 : vector<8x128xf32>
    %35 = arith.mulf %26, %8 : vector<8x128xf32>
    %36 = arith.mulf %20, %28 : vector<8x128xf32>
    %37 = arith.addf %35, %36 : vector<8x128xf32>
    %38 = math.tanh %37 : vector<8x128xf32>
    %39 = arith.mulf %34, %38 : vector<8x128xf32>
    %c0_16 = arith.constant 0 : index
    %c0_17 = arith.constant 0 : index
    %c0_18 = arith.constant 0 : index
    %40 = vector.load %arg9[%c0_16, %c0_17, %c0_18] : memref<2x8x128xf32, #tpu.memory_space<vmem>>, vector<1x8x128xf32>
    %41 = vector.shape_cast %40 : vector<1x8x128xf32> to vector<8x128xf32>
    %42 = vector.shape_cast %39 : vector<8x128xf32> to vector<1x8x128xf32>
    tpu.vector_store %arg9[%c0_16, %c0_17, %c0_18], %42 {strides = array<i32>} : memref<2x8x128xf32, #tpu.memory_space<vmem>>, vector<1x8x128xf32>,
    %c0_19 = arith.constant 0 : index
    %c0_20 = arith.constant 0 : index
    %c0_21 = arith.constant 0 : index
    %43 = vector.load %arg10[%c0_19, %c0_20, %c0_21] : memref<2x8x128xf32, #tpu.memory_space<vmem>>, vector<1x8x128xf32>
    %44 = vector.shape_cast %43 : vector<1x8x128xf32> to vector<8x128xf32>
    %45 = vector.shape_cast %37 : vector<8x128xf32> to vector<1x8x128xf32>
    tpu.vector_store %arg10[%c0_19, %c0_20, %c0_21], %45 {strides = array<i32>} : memref<2x8x128xf32, #tpu.memory_space<vmem>>, vector<1x8x128xf32>,
    %c1 = arith.constant 1 : index
    %c0_22 = arith.constant 0 : index
    %c0_23 = arith.constant 0 : index
    %46 = vector.load %arg9[%c1, %c0_22, %c0_23] : memref<2x8x128xf32, #tpu.memory_space<vmem>>, vector<1x8x128xf32>
    %47 = vector.shape_cast %46 : vector<1x8x128xf32> to vector<8x128xf32>
    %c1_24 = arith.constant 1 : index
    %c0_25 = arith.constant 0 : index
    %c0_26 = arith.constant 0 : index
    %48 = vector.load %arg10[%c1_24, %c0_25, %c0_26] : memref<2x8x128xf32, #tpu.memory_space<vmem>>, vector<1x8x128xf32>
    %49 = vector.shape_cast %48 : vector<1x8x128xf32> to vector<8x128xf32>
    %50 = tpu.concatenate %39, %47 in 1 : vector<8x128xf32>, vector<8x128xf32> -> vector<8x256xf32>
    %c0_27 = arith.constant 0 : index
    %c0_28 = arith.constant 0 : index
    %51 = vector.load %arg5[%c0_27, %c0_28] : memref<256x512xf32, #tpu.memory_space<vmem>>, vector<256x512xf32>
    %cst_29 = arith.constant dense<0.000000e+00> : vector<8x512xf32>
    %52 = tpu.matmul %50, %51, %cst_29 {dimension_numbers = #tpu.dot_dimension_numbers<[1], [0], [0], [1], [0, 0, 1, 1], [], []>} : vector<8x256xf32>, vector<256x512xf32>, vector<8x512xf32> -> vector<8x512xf32>
    %c0_30 = arith.constant 0 : index
    %c0_31 = arith.constant 0 : index
    %53 = vector.load %arg7[%c0_30, %c0_31] : memref<1x512xf32, #tpu.memory_space<vmem>>, vector<1x512xf32>
    %54 = vector.broadcast %53 : vector<1x512xf32> to vector<8x512xf32>
    %55 = arith.addf %52, %54 : vector<8x512xf32>
    %56 = vector.extract_strided_slice %55 {offsets = [0, 0], sizes = [8, 128], strides = [1, 1]} : vector<8x512xf32> to vector<8x128xf32>
    %57 = arith.negf %56 : vector<8x128xf32>
    %58 = math.exp %57 : vector<8x128xf32>
    %cst_32 = arith.constant 1.000000e+00 : f32
    %59 = vector.broadcast %cst_32 : f32 to vector<8x128xf32>
    %60 = arith.addf %59, %58 : vector<8x128xf32>
    %61 = arith.divf %59, %60 : vector<8x128xf32>
    %62 = vector.extract_strided_slice %55 {offsets = [0, 128], sizes = [8, 128], strides = [1, 1]} : vector<8x512xf32> to vector<8x128xf32>
    %63 = arith.negf %62 : vector<8x128xf32>
    %64 = math.exp %63 : vector<8x128xf32>
    %cst_33 = arith.constant 1.000000e+00 : f32
    %65 = vector.broadcast %cst_33 : f32 to vector<8x128xf32>
    %66 = arith.addf %65, %64 : vector<8x128xf32>
    %67 = arith.divf %65, %66 : vector<8x128xf32>
    %68 = vector.extract_strided_slice %55 {offsets = [0, 256], sizes = [8, 128], strides = [1, 1]} : vector<8x512xf32> to vector<8x128xf32>
    %69 = math.tanh %68 : vector<8x128xf32>
    %70 = vector.extract_strided_slice %55 {offsets = [0, 384], sizes = [8, 128], strides = [1, 1]} : vector<8x512xf32> to vector<8x128xf32>
    %71 = arith.negf %70 : vector<8x128xf32>
    %72 = math.exp %71 : vector<8x128xf32>
    %cst_34 = arith.constant 1.000000e+00 : f32
    %73 = vector.broadcast %cst_34 : f32 to vector<8x128xf32>
    %74 = arith.addf %73, %72 : vector<8x128xf32>
    %75 = arith.divf %73, %74 : vector<8x128xf32>
    %76 = arith.mulf %67, %49 : vector<8x128xf32>
    %77 = arith.mulf %61, %69 : vector<8x128xf32>
    %78 = arith.addf %76, %77 : vector<8x128xf32>
    %79 = math.tanh %78 : vector<8x128xf32>
    %80 = arith.mulf %75, %79 : vector<8x128xf32>
    %c1_35 = arith.constant 1 : index
    %c0_36 = arith.constant 0 : index
    %c0_37 = arith.constant 0 : index
    %81 = vector.load %arg9[%c1_35, %c0_36, %c0_37] : memref<2x8x128xf32, #tpu.memory_space<vmem>>, vector<1x8x128xf32>
    %82 = vector.shape_cast %81 : vector<1x8x128xf32> to vector<8x128xf32>
    %83 = vector.shape_cast %80 : vector<8x128xf32> to vector<1x8x128xf32>
    tpu.vector_store %arg9[%c1_35, %c0_36, %c0_37], %83 {strides = array<i32>} : memref<2x8x128xf32, #tpu.memory_space<vmem>>, vector<1x8x128xf32>,
    %c1_38 = arith.constant 1 : index
    %c0_39 = arith.constant 0 : index
    %c0_40 = arith.constant 0 : index
    %84 = vector.load %arg10[%c1_38, %c0_39, %c0_40] : memref<2x8x128xf32, #tpu.memory_space<vmem>>, vector<1x8x128xf32>
    %85 = vector.shape_cast %84 : vector<1x8x128xf32> to vector<8x128xf32>
    %86 = vector.shape_cast %78 : vector<8x128xf32> to vector<1x8x128xf32>
    tpu.vector_store %arg10[%c1_38, %c0_39, %c0_40], %86 {strides = array<i32>} : memref<2x8x128xf32, #tpu.memory_space<vmem>>, vector<1x8x128xf32>,
    %c0_41 = arith.constant 0 : index
    %c0_42 = arith.constant 0 : index
    %c0_43 = arith.constant 0 : index
    %87 = vector.load %arg8[%c0_41, %c0_42, %c0_43] : memref<1x8x128xf32, #tpu.memory_space<vmem>>, vector<1x8x128xf32>
    %88 = vector.shape_cast %87 : vector<1x8x128xf32> to vector<8x128xf32>
    %89 = vector.shape_cast %80 : vector<8x128xf32> to vector<1x8x128xf32>
    tpu.vector_store %arg8[%c0_41, %c0_42, %c0_43], %89 {strides = array<i32>} : memref<1x8x128xf32, #tpu.memory_space<vmem>>, vector<1x8x128xf32>,
    return
  }
  func.func @transform_0(%arg0: i32) -> (i32, i32, i32) {
    %c0_i32 = arith.constant 0 : i32
    %c0_i32_0 = arith.constant 0 : i32
    %c0_i32_1 = arith.constant 0 : i32
    return %arg0, %c0_i32, %c0_i32_0 : i32, i32, i32
  }
  func.func @transform_1(%arg0: i32) -> (i32, i32, i32) {
    %c0_i32 = arith.constant 0 : i32
    %c0_i32_0 = arith.constant 0 : i32
    %c0_i32_1 = arith.constant 0 : i32
    %c0_i32_2 = arith.constant 0 : i32
    return %c0_i32, %c0_i32_0, %c0_i32_1 : i32, i32, i32
  }
  func.func @transform_2(%arg0: i32) -> (i32, i32, i32) {
    %c0_i32 = arith.constant 0 : i32
    %c0_i32_0 = arith.constant 0 : i32
    %c0_i32_1 = arith.constant 0 : i32
    %c0_i32_2 = arith.constant 0 : i32
    return %c0_i32, %c0_i32_0, %c0_i32_1 : i32, i32, i32
  }
  func.func @transform_3(%arg0: i32) -> (i32, i32) {
    %c0_i32 = arith.constant 0 : i32
    %c0_i32_0 = arith.constant 0 : i32
    %c0_i32_1 = arith.constant 0 : i32
    return %c0_i32, %c0_i32_0 : i32, i32
  }
  func.func @transform_4(%arg0: i32) -> (i32, i32) {
    %c0_i32 = arith.constant 0 : i32
    %c0_i32_0 = arith.constant 0 : i32
    %c0_i32_1 = arith.constant 0 : i32
    return %c0_i32, %c0_i32_0 : i32, i32
  }
  func.func @transform_5(%arg0: i32) -> (i32, i32) {
    %c0_i32 = arith.constant 0 : i32
    %c0_i32_0 = arith.constant 0 : i32
    %c0_i32_1 = arith.constant 0 : i32
    return %c0_i32, %c0_i32_0 : i32, i32
  }
  func.func @transform_6(%arg0: i32) -> (i32, i32) {
    %c0_i32 = arith.constant 0 : i32
    %c0_i32_0 = arith.constant 0 : i32
    %c0_i32_1 = arith.constant 0 : i32
    return %c0_i32, %c0_i32_0 : i32, i32
  }
  func.func @transform_7(%arg0: i32) -> (i32, i32, i32) {
    %c0_i32 = arith.constant 0 : i32
    %c0_i32_0 = arith.constant 0 : i32
    %c0_i32_1 = arith.constant 0 : i32
    return %arg0, %c0_i32, %c0_i32_0 : i32, i32, i32
  }
  func.func @transform_8(%arg0: i32) -> (i32, i32, i32) {
    %c0_i32 = arith.constant 0 : i32
    %c0_i32_0 = arith.constant 0 : i32
    %c0_i32_1 = arith.constant 0 : i32
    %c0_i32_2 = arith.constant 0 : i32
    return %c0_i32, %c0_i32_0, %c0_i32_1 : i32, i32, i32
  }
  func.func @transform_9(%arg0: i32) -> (i32, i32, i32) {
    %c0_i32 = arith.constant 0 : i32
    %c0_i32_0 = arith.constant 0 : i32
    %c0_i32_1 = arith.constant 0 : i32
    %c0_i32_2 = arith.constant 0 : i32
    return %c0_i32, %c0_i32_0, %c0_i32_1 : i32, i32, i32
  }
}

</mosaic_0001>

<bundles_post_ra>
// kernel: lstm_forward.1
= control target key start
LH: loop header
LB: loop body
LE: loop exit
PB: predicated region body
PF: predicated region fallthrough
CT: control target
= control target key end

     0   :  { %15 = vsyncpa [#allocation3], 0  ;;  %s1436_s0 = inlined_call_operand.vmem [shape: f32[8,8,128], index: 0, kind: input, shape index: {}]   ;;  %s1437_s1 = inlined_call_operand.vmem [shape: f32[2,8,128], index: 1, kind: input, shape index: {}]   ;;  %s1438_s2 = inlined_call_operand.vmem [shape: f32[2,8,128], index: 2, kind: input, shape index: {}]   ;;  %s1439_s3 = inlined_call_operand.hbm [shape: f32[256,512], index: 3, kind: input, shape index: {}]   ;;  %s1440_s4 = inlined_call_operand.hbm [shape: f32[256,512], index: 4, kind: input, shape index: {}]   ;;  %s1441_s5 = inlined_call_operand.vmem [shape: f32[1,512], index: 5, kind: input, shape index: {}]   ;;  %s1442_s6 = inlined_call_operand.vmem [shape: f32[1,512], index: 6, kind: input, shape index: {}]   ;;  %s1443_s7 = inlined_call_operand.vmem [shape: f32[8,8,128], index: 7, kind: output, shape index: {0}]   ;;  %s1444_s8 = inlined_call_operand.vmem [shape: f32[2,8,128], index: 8, kind: output, shape index: {1}]   ;;  %s1445_s9 = inlined_call_operand.vmem [shape: f32[2,8,128], index: 9, kind: output, shape index: {2}]  }
   0x1   :  { %16 = vsyncpa [#allocation5], 0  ;;  %s1305_s30 = smov 0  }
   0x2 LB: > { %s1311_s10 = sadd.s32 4294967295, %s1249_s30   ;;  %p1098_p0 = scmp.ge.s32.totalorder %s1249_s30, 1  ;;  %s1249_s30 = sphi %s1305_s30, %s22_s30  }
   0x3   : > { %p247_p1 = scmp.lt.s32.totalorder %s1249_s30, 9  ;;  %s1251_s11 = smov [#allocation2]  }
   0x4   : > { %s265_s12 = sshll.u32 %s1251_s11, 4  ;;  %p1135_p4 = scmp.eq.s32.totalorder %s1311_s10, 0  ;;  %s266_s12 = int_to_ptr.vmem [resolvable:$true] %s265_s12 }
   0x5   : > { %p1316_p3 = pnand %p1098_p0, %p247_p1  ;;  %s1252_s14 = smov [#allocation4]  }
   0x6   : > { %s278_s15 = sshll.u32 %s1252_s14, 4  ;;  %s1194_s17 = scalar_lea.vmem %s266_s12, 16384  ;;  %s279_s15 = int_to_ptr.vmem [resolvable:$true] %s278_s15 }
   0x7   : > { %p1128_p5 = pneg %p1316_p3  ;;  %p1195_p8 = scmp.ne.s32.totalorder %s266_s12, %s1194_s17 }
   0x8   : > { %p1202_p11 = scmp.lt.s32.totalorder %s266_s12, %s266_s12  ;;  %p1203_p12 = scmp.lt.s32.totalorder %s1194_s17, %s1194_s17 }
   0x9   : > { %p1325_p6 = pnand %p1135_p4, %p1128_p5 }
   0xa   : > { %p1204_p13 = por %p1203_p12, %p1202_p11 }
   0xb   : > { %p1185_p7 = pneg %p1325_p6 }
   0xd   : > { %p1197_p9 = pnand %p1195_p8, %p1185_p7 }
   0xf   : > { %p1198_p10 = pneg %p1197_p9 }
  0x11   : > { %p1205_p0 = pnand %p1204_p13, %p1198_p10 }
  0x13   : > { %1208 = shalt.err (!%p1205_p0)
}
  0x14   : > { %s1253_s18 = smov 512   ;;  %s1254_s19 = smov 32  }
  0x15   : > { %1131 = dma.hbm_to_vmem [thread:$0]  (!%p1325_p6), %s1439_s3, 16384, %s266_s12, [#allocation3], %s1253_s18, %s1253_s18, %s1254_s19  }
  0x16   : > { %s1220_s22 = scalar_lea.vmem %s279_s15, 16384  ;;  %p1228_p9 = scmp.lt.s32.totalorder %s279_s15, %s279_s15 }
  0x17   : > { %p1221_p1 = scmp.ne.s32.totalorder %s279_s15, %s1220_s22  ;;  %p1229_p2 = scmp.lt.s32.totalorder %s1220_s22, %s1220_s22 }
  0x19   : > { %p1223_p5 = pnand %p1221_p1, %p1185_p7  ;;  %p1230_p11 = por %p1229_p2, %p1228_p9 }
  0x1b   : > { %p1224_p8 = pneg %p1223_p5 }
  0x1d   : > { %p1231_p10 = pnand %p1230_p11, %p1224_p8 }
  0x1f   : > { %1234 = shalt.err (!%p1231_p10)
}
  0x20   : > { %1134 = dma.hbm_to_vmem [thread:$0]  (!%p1325_p6), %s1440_s4, 16384, %s279_s15, [#allocation5], %s1253_s18, %s1253_s18, %s1254_s19  }
  0x21   : > { %307 = sbr.rel (%p1316_p3) target bundleno = 616 (0x268), region = 48 }
  0x26   : > { %1240 = dma.done.wait (%p1135_p4), [#allocation3], 16384  }
  0x27   : > { %1242 = vsyncadd (%p1135_p4), [#allocation3], 4294950912 }
  0x28   : > { %1244 = dma.done.wait (%p1135_p4), [#allocation5], 16384  }
  0x29   : > { %1246 = vsyncadd (%p1135_p4), [#allocation5], 4294950912  ;;  %p345_p2 = scmp.lt.s32.totalorder %s1311_s10, 7  ;;  %p1448_p3 = scmp.ne.s32.totalorder %s1311_s10, 0 }
  0x2b   : > { %s346_s25 = scalar_select %p345_p2, %s1311_s10, 7 }
  0x2c   : > { %356 = sbr.rel (%p1448_p3) target bundleno = 52 (0x34), region = 60 }
  0x2d   : > { %s1105_s26 = sshll.u32 %s346_s25, 3 }
  0x2e   : > { %s1362_s29 = scalar_lea.vmem %s1436_s0, %s1105_s26  ;;  %s1367_s13 = scalar_lea.vmem %s1443_s7, %s1105_s26 }
  0x31   : > { %v357_v0 = vld [vmem:[%s1437_s1] sm:$0xff]  ;;  %v358_v1 = vld [vmem:[%s1437_s1 + $0x8] sm:$0xff] }
  0x32   : > { %v361_v2 = vld [vmem:[%s1438_s2] sm:$0xff]  ;;  %359 = vst [vmem:[%s1444_s8] sm:$0xff] %v357_v0  ;;  %360 = vst [vmem:[%s1444_s8 + $0x8] sm:$0xff] %v358_v1  ;;  %v362_v3 = vld [vmem:[%s1438_s2 + $0x8] sm:$0xff] }
  0x33   : > { %363 = vst [vmem:[%s1445_s9] sm:$0xff] %v361_v2  ;;  %364 = vst [vmem:[%s1445_s9 + $0x8] sm:$0xff] %v362_v3 }
  0x34 PF: > { %v429_v4 = vld [vmem:[#allocation2 + $0x1e8] sm:$0xff]  ;;  %v428_v5 = vld [vmem:[#allocation2 + $0x1e0] sm:$0xff]  ;;  %v431_v12 = vld [vmem:[#allocation2 + $0x1f8] sm:$0xff] }
  0x35   : > { %v425_v6 = vld [vmem:[#allocation2 + $0x1c8] sm:$0xff]  ;;  %518 = vmatprep.subr.mxu0 %v429_v4  ;;  %v424_v7 = vld [vmem:[#allocation2 + $0x1c0] sm:$0xff]  ;;  %589 = vmatprep.subr.mxu1 %v431_v12  ;;  %v430_v14 = vld [vmem:[#allocation2 + $0x1f0] sm:$0xff] }
  0x36   : > { %519 = vmatpush1.msra.mxu0 %v428_v5  ;;  %v421_v8 = vld [vmem:[#allocation2 + $0x1a8] sm:$0xff]  ;;  %v420_v9 = vld [vmem:[#allocation2 + $0x1a0] sm:$0xff]  ;;  %590 = vmatpush1.msra.mxu1 %v430_v14  ;;  %v427_v16 = vld [vmem:[#allocation2 + $0x1d8] sm:$0xff] }
  0x37   : > { %520 = vmatprep.subr.mxu0 %v425_v6  ;;  %v417_v10 = vld [vmem:[#allocation2 + $0x188] sm:$0xff]  ;;  %v416_v11 = vld [vmem:[#allocation2 + $0x180] sm:$0xff]  ;;  %v426_v17 = vld [vmem:[#allocation2 + $0x1d0] sm:$0xff]  ;;  %591 = vmatprep.subr.mxu1 %v427_v16 }
  0x38   : > { %521 = vmatpush1.msra.mxu0 %v424_v7  ;;  %v413_v13 = vld [vmem:[#allocation2 + $0x168] sm:$0xff]  ;;  %v412_v15 = vld [vmem:[#allocation2 + $0x160] sm:$0xff]  ;;  %v423_v19 = vld [vmem:[#allocation2 + $0x1b8] sm:$0xff]  ;;  %592 = vmatpush1.msra.mxu1 %v426_v17 }
  0x39   : > { %522 = vmatprep.subr.mxu0 %v421_v8  ;;  %v409_v18 = vld [vmem:[#allocation2 + $0x148] sm:$0xff]  ;;  %v408_v20 = vld [vmem:[#allocation2 + $0x140] sm:$0xff]  ;;  %v422_v21 = vld [vmem:[#allocation2 + $0x1b0] sm:$0xff]  ;;  %593 = vmatprep.subr.mxu1 %v423_v19 }
  0x3a   : > { %523 = vmatpush1.msra.mxu0 %v420_v9  ;;  %v419_v22 = vld [vmem:[#allocation2 + $0x198] sm:$0xff]  ;;  %v405_v23 = vld [vmem:[#allocation2 + $0x128] sm:$0xff]  ;;  %v418_v24 = vld [vmem:[#allocation2 + $0x190] sm:$0xff]  ;;  %594 = vmatpush1.msra.mxu1 %v422_v21 }
  0x3b   : > { %524 = vmatprep.subr.mxu0 %v417_v10  ;;  %v404_v25 = vld [vmem:[#allocation2 + $0x120] sm:$0xff]  ;;  %v415_v26 = vld [vmem:[#allocation2 + $0x178] sm:$0xff]  ;;  %v401_v27 = vld [vmem:[#allocation2 + $0x108] sm:$0xff]  ;;  %595 = vmatprep.subr.mxu1 %v419_v22 }
  0x3c   : > { %525 = vmatpush1.msra.mxu0 %v416_v11  ;;  %v414_v28 = vld [vmem:[#allocation2 + $0x170] sm:$0xff]  ;;  %v400_v29 = vld [vmem:[#allocation2 + $0x100] sm:$0xff]  ;;  %596 = vmatpush1.msra.mxu1 %v418_v24  ;;  %v411_v30 = vld [vmem:[#allocation2 + $0x158] sm:$0xff] }
  0x3d   : > { %526 = vmatprep.subr.mxu0 %v413_v13  ;;  %v397_v31 = vld [vmem:[#allocation2 + $0xe8] sm:$0xff]  ;;  %597 = vmatprep.subr.mxu1 %v415_v26  ;;  %v410_v32 = vld [vmem:[#allocation2 + $0x150] sm:$0xff]  ;;  %v396_v33 = vld [vmem:[#allocation2 + $0xe0] sm:$0xff] }
  0x3e   : > { %527 = vmatpush1.msra.mxu0 %v412_v15  ;;  %598 = vmatpush1.msra.mxu1 %v414_v28  ;;  %v407_v34 = vld [vmem:[#allocation2 + $0x138] sm:$0xff]  ;;  %v393_v35 = vld [vmem:[#allocation2 + $0xc8] sm:$0xff]  ;;  %v406_v36 = vld [vmem:[#allocation2 + $0x130] sm:$0xff] }
  0x3f   : > { %528 = vmatprep.subr.mxu0 %v409_v18  ;;  %599 = vmatprep.subr.mxu1 %v411_v30  ;;  %v392_v37 = vld [vmem:[#allocation2 + $0xc0] sm:$0xff]  ;;  %v403_v38 = vld [vmem:[#allocation2 + $0x118] sm:$0xff]  ;;  %v389_v39 = vld [vmem:[#allocation2 + $0xa8] sm:$0xff] }
  0x40   : > { %529 = vmatpush1.msra.mxu0 %v408_v20  ;;  %600 = vmatpush1.msra.mxu1 %v410_v32  ;;  %v402_v40 = vld [vmem:[#allocation2 + $0x110] sm:$0xff]  ;;  %v388_v41 = vld [vmem:[#allocation2 + $0xa0] sm:$0xff]  ;;  %v399_v42 = vld [vmem:[#allocation2 + $0xf8] sm:$0xff] }
  0x41   : > { %530 = vmatprep.subr.mxu0 %v405_v23  ;;  %601 = vmatprep.subr.mxu1 %v407_v34  ;;  %v385_v43 = vld [vmem:[#allocation2 + $0x88] sm:$0xff]  ;;  %v398_v44 = vld [vmem:[#allocation2 + $0xf0] sm:$0xff]  ;;  %v384_v45 = vld [vmem:[#allocation2 + $0x80] sm:$0xff] }
  0x42   : > { %531 = vmatpush1.msra.mxu0 %v404_v25  ;;  %602 = vmatpush1.msra.mxu1 %v406_v36  ;;  %v395_v46 = vld [vmem:[#allocation2 + $0xd8] sm:$0xff]  ;;  %v381_v47 = vld [vmem:[#allocation2 + $0x68] sm:$0xff]  ;;  %v394_v48 = vld [vmem:[#allocation2 + $0xd0] sm:$0xff] }
  0x43   : > { %532 = vmatprep.subr.mxu0 %v401_v27  ;;  %603 = vmatprep.subr.mxu1 %v403_v38  ;;  %v380_v49 = vld [vmem:[#allocation2 + $0x60] sm:$0xff]  ;;  %v391_v50 = vld [vmem:[#allocation2 + $0xb8] sm:$0xff]  ;;  %v377_v51 = vld [vmem:[#allocation2 + $0x48] sm:$0xff] }
  0x44   : > { %533 = vmatpush1.msra.mxu0 %v400_v29  ;;  %604 = vmatpush1.msra.mxu1 %v402_v40  ;;  %v390_v52 = vld [vmem:[#allocation2 + $0xb0] sm:$0xff]  ;;  %v376_v53 = vld [vmem:[#allocation2 + $0x40] sm:$0xff]  ;;  %v387_v54 = vld [vmem:[#allocation2 + $0x98] sm:$0xff] }
  0x45   : > { %534 = vmatprep.subr.mxu0 %v397_v31  ;;  %605 = vmatprep.subr.mxu1 %v399_v42  ;;  %v373_v55 = vld [vmem:[#allocation2 + $0x28] sm:$0xff]  ;;  %v386_v56 = vld [vmem:[#allocation2 + $0x90] sm:$0xff]  ;;  %v372_v57 = vld [vmem:[#allocation2 + $0x20] sm:$0xff] }
  0x46   : > { %535 = vmatpush1.msra.mxu0 %v396_v33  ;;  %606 = vmatpush1.msra.mxu1 %v398_v44  ;;  %v383_v58 = vld [vmem:[#allocation2 + $0x78] sm:$0xff]  ;;  %v369_v59 = vld [vmem:[#allocation2 + $0x8] sm:$0xff]  ;;  %v382_v60 = vld [vmem:[#allocation2 + $0x70] sm:$0xff] }
  0x47   : > { %536 = vmatprep.subr.mxu0 %v393_v35  ;;  %607 = vmatprep.subr.mxu1 %v395_v46  ;;  %v368_v61 = vld [vmem:[#allocation2] sm:$0xff]  ;;  %v379_v62 = vld [vmem:[#allocation2 + $0x58] sm:$0xff]  ;;  %v493_v63 = vld [vmem:[#allocation2 + $0x3e8] sm:$0xff] }
  0x48   : > { %537 = vmatpush1.msra.mxu0 %v392_v37  ;;  %608 = vmatpush1.msra.mxu1 %v394_v48  ;;  %v378_v0 = vld [vmem:[#allocation2 + $0x50] sm:$0xff]  ;;  %v492_v1 = vld [vmem:[#allocation2 + $0x3e0] sm:$0xff]  ;;  %v375_v2 = vld [vmem:[#allocation2 + $0x38] sm:$0xff] }
  0x49   : > { %538 = vmatprep.subr.mxu0 %v389_v39  ;;  %609 = vmatprep.subr.mxu1 %v391_v50  ;;  %v489_v3 = vld [vmem:[#allocation2 + $0x3c8] sm:$0xff]  ;;  %v374_v4 = vld [vmem:[#allocation2 + $0x30] sm:$0xff]  ;;  %v488_v5 = vld [vmem:[#allocation2 + $0x3c0] sm:$0xff] }
  0x4a   : > { %539 = vmatpush1.msra.mxu0 %v388_v41  ;;  %610 = vmatpush1.msra.mxu1 %v390_v52  ;;  %v371_v6 = vld [vmem:[#allocation2 + $0x18] sm:$0xff]  ;;  %v485_v7 = vld [vmem:[#allocation2 + $0x3a8] sm:$0xff]  ;;  %v370_v8 = vld [vmem:[#allocation2 + $0x10] sm:$0xff] }
  0x4b   : > { %540 = vmatprep.subr.mxu0 %v385_v43  ;;  %611 = vmatprep.subr.mxu1 %v387_v54  ;;  %v484_v9 = vld [vmem:[#allocation2 + $0x3a0] sm:$0xff]  ;;  %v495_v10 = vld [vmem:[#allocation2 + $0x3f8] sm:$0xff]  ;;  %v481_v11 = vld [vmem:[#allocation2 + $0x388] sm:$0xff] }
  0x4c   : > { %541 = vmatpush1.msra.mxu0 %v384_v45  ;;  %612 = vmatpush1.msra.mxu1 %v386_v56  ;;  %v494_v12 = vld [vmem:[#allocation2 + $0x3f0] sm:$0xff]  ;;  %v480_v13 = vld [vmem:[#allocation2 + $0x380] sm:$0xff]  ;;  %v491_v14 = vld [vmem:[#allocation2 + $0x3d8] sm:$0xff] }
  0x4d   : > { %542 = vmatprep.subr.mxu0 %v381_v47  ;;  %613 = vmatprep.subr.mxu1 %v383_v58  ;;  %v477_v15 = vld [vmem:[#allocation2 + $0x368] sm:$0xff]  ;;  %v490_v16 = vld [vmem:[#allocation2 + $0x3d0] sm:$0xff]  ;;  %v476_v17 = vld [vmem:[#allocation2 + $0x360] sm:$0xff] }
  0x4e   : > { %543 = vmatpush1.msra.mxu0 %v380_v49  ;;  %614 = vmatpush1.msra.mxu1 %v382_v60  ;;  %v487_v18 = vld [vmem:[#allocation2 + $0x3b8] sm:$0xff]  ;;  %v473_v19 = vld [vmem:[#allocation2 + $0x348] sm:$0xff]  ;;  %v486_v20 = vld [vmem:[#allocation2 + $0x3b0] sm:$0xff] }
  0x4f   : > { %544 = vmatprep.subr.mxu0 %v377_v51  ;;  %615 = vmatprep.subr.mxu1 %v379_v62  ;;  %v472_v21 = vld [vmem:[#allocation2 + $0x340] sm:$0xff]  ;;  %v483_v22 = vld [vmem:[#allocation2 + $0x398] sm:$0xff]  ;;  %v469_v23 = vld [vmem:[#allocation2 + $0x328] sm:$0xff] }
  0x50   : > { %545 = vmatpush1.msra.mxu0 %v376_v53  ;;  %616 = vmatpush1.msra.mxu1 %v378_v0  ;;  %v482_v24 = vld [vmem:[#allocation2 + $0x390] sm:$0xff]  ;;  %v468_v25 = vld [vmem:[#allocation2 + $0x320] sm:$0xff]  ;;  %v479_v26 = vld [vmem:[#allocation2 + $0x378] sm:$0xff] }
  0x51   : > { %546 = vmatprep.subr.mxu0 %v373_v55  ;;  %617 = vmatprep.subr.mxu1 %v375_v2  ;;  %v465_v27 = vld [vmem:[#allocation2 + $0x308] sm:$0xff]  ;;  %v478_v28 = vld [vmem:[#allocation2 + $0x370] sm:$0xff]  ;;  %v464_v29 = vld [vmem:[#allocation2 + $0x300] sm:$0xff] }
  0x52   : > { %547 = vmatpush1.msra.mxu0 %v372_v57  ;;  %618 = vmatpush1.msra.mxu1 %v374_v4  ;;  %v475_v30 = vld [vmem:[#allocation2 + $0x358] sm:$0xff]  ;;  %v461_v31 = vld [vmem:[#allocation2 + $0x2e8] sm:$0xff]  ;;  %v474_v32 = vld [vmem:[#allocation2 + $0x350] sm:$0xff] }
  0x53   : > { %548 = vmatprep.subr.mxu0 %v369_v59  ;;  %619 = vmatprep.subr.mxu1 %v371_v6  ;;  %v460_v33 = vld [vmem:[#allocation2 + $0x2e0] sm:$0xff]  ;;  %v471_v34 = vld [vmem:[#allocation2 + $0x338] sm:$0xff]  ;;  %v457_v35 = vld [vmem:[#allocation2 + $0x2c8] sm:$0xff] }
  0x54   : > { %549 = vmatpush1.msra.mxu0 %v368_v61  ;;  %620 = vmatpush1.msra.mxu1 %v370_v8  ;;  %v470_v36 = vld [vmem:[#allocation2 + $0x330] sm:$0xff]  ;;  %v456_v37 = vld [vmem:[#allocation2 + $0x2c0] sm:$0xff]  ;;  %v467_v38 = vld [vmem:[#allocation2 + $0x318] sm:$0xff] }
  0x55   : > { %550 = vmatprep.subr.mxu0 %v493_v63  ;;  %621 = vmatprep.subr.mxu1 %v495_v10  ;;  %v453_v39 = vld [vmem:[#allocation2 + $0x2a8] sm:$0xff]  ;;  %v366_v40 = vld [vmem:[%s1444_s8] sm:$0xff]  ;;  %v466_v42 = vld [vmem:[#allocation2 + $0x310] sm:$0xff] }
  0x56   : > { %551 = vmatpush2.msra.mxu0 %v492_v1  ;;  %622 = vmatpush2.msra.mxu1 %v494_v12  ;;  %v452_v41 = vld [vmem:[#allocation2 + $0x2a0] sm:$0xff]  ;;  %v449_v43 = vld [vmem:[#allocation2 + $0x288] sm:$0xff]  ;;  %v463_v44 = vld [vmem:[#allocation2 + $0x2f8] sm:$0xff] }
  0x57   : > { %552 = vmatprep.subr.mxu0 %v489_v3  ;;  %623 = vmatprep.subr.mxu1 %v491_v14  ;;  %v448_v45 = vld [vmem:[#allocation2 + $0x280] sm:$0xff]  ;;  %v462_v46 = vld [vmem:[#allocation2 + $0x2f0] sm:$0xff]  ;;  %v445_v47 = vld [vmem:[#allocation2 + $0x268] sm:$0xff] }
  0x58   : > { %553 = vmatpush2.msra.mxu0 %v488_v5  ;;  %624 = vmatpush2.msra.mxu1 %v490_v16  ;;  %v459_v48 = vld [vmem:[#allocation2 + $0x2d8] sm:$0xff]  ;;  %v444_v49 = vld [vmem:[#allocation2 + $0x260] sm:$0xff]  ;;  %v458_v50 = vld [vmem:[#allocation2 + $0x2d0] sm:$0xff] }
  0x59   : > { %554 = vmatprep.subr.mxu0 %v485_v7  ;;  %625 = vmatprep.subr.mxu1 %v487_v18  ;;  %v441_v51 = vld [vmem:[#allocation2 + $0x248] sm:$0xff]  ;;  %v455_v52 = vld [vmem:[#allocation2 + $0x2b8] sm:$0xff]  ;;  %v440_v53 = vld [vmem:[#allocation2 + $0x240] sm:$0xff] }
  0x5a   : > { %555 = vmatpush2.msra.mxu0 %v484_v9  ;;  %626 = vmatpush2.msra.mxu1 %v486_v20  ;;  %v454_v54 = vld [vmem:[#allocation2 + $0x2b0] sm:$0xff]  ;;  %v437_v55 = vld [vmem:[#allocation2 + $0x228] sm:$0xff]  ;;  %v451_v56 = vld [vmem:[#allocation2 + $0x298] sm:$0xff] }
  0x5b   : > { %556 = vmatprep.subr.mxu0 %v481_v11  ;;  %627 = vmatprep.subr.mxu1 %v483_v22  ;;  %v436_v57 = vld [vmem:[#allocation2 + $0x220] sm:$0xff]  ;;  %v450_v58 = vld [vmem:[#allocation2 + $0x290] sm:$0xff]  ;;  %v433_v59 = vld [vmem:[#allocation2 + $0x208] sm:$0xff] }
  0x5c   : > { %557 = vmatpush2.msra.mxu0 %v480_v13  ;;  %628 = vmatpush2.msra.mxu1 %v482_v24  ;;  %v447_v60 = vld [vmem:[#allocation2 + $0x278] sm:$0xff]  ;;  %v432_v61 = vld [vmem:[#allocation2 + $0x200] sm:$0xff]  ;;  %v446_v62 = vld [vmem:[#allocation2 + $0x270] sm:$0xff] }
  0x5d   : > { %558 = vmatprep.subr.mxu0 %v477_v15  ;;  %629 = vmatprep.subr.mxu1 %v479_v26  ;;  %v365_v63 = vld [vmem:[%s1362_s29] sm:$0xff]  ;;  %v443_v0 = vld [vmem:[#allocation2 + $0x258] sm:$0xff]  ;;  %v442_v1 = vld [vmem:[#allocation2 + $0x250] sm:$0xff] }
  0x5e   : > { %559 = vmatpush2.msra.mxu0 %v476_v17  ;;  %630 = vmatpush2.msra.mxu1 %v478_v28  ;;  %v439_v2 = vld [vmem:[#allocation2 + $0x238] sm:$0xff]  ;;  %v751_v3 = vld [vmem:[#allocation4 + $0x1e8] sm:$0xff]  ;;  %v438_v4 = vld [vmem:[#allocation2 + $0x230] sm:$0xff] }
  0x5f   : > { %560 = vmatprep.subr.mxu0 %v473_v19  ;;  %631 = vmatprep.subr.mxu1 %v475_v30  ;;  %v750_v5 = vld [vmem:[#allocation4 + $0x1e0] sm:$0xff]  ;;  %v435_v6 = vld [vmem:[#allocation2 + $0x218] sm:$0xff]  ;;  %v747_v7 = vld [vmem:[#allocation4 + $0x1c8] sm:$0xff] }
  0x60   : > { %561 = vmatpush2.msra.mxu0 %v472_v21  ;;  %632 = vmatpush2.msra.mxu1 %v474_v32  ;;  %v434_v8 = vld [vmem:[#allocation2 + $0x210] sm:$0xff]  ;;  %v746_v9 = vld [vmem:[#allocation4 + $0x1c0] sm:$0xff]  ;;  %v753_v10 = vld [vmem:[#allocation4 + $0x1f8] sm:$0xff] }
  0x61   : > { %562 = vmatprep.subr.mxu0 %v469_v23  ;;  %633 = vmatprep.subr.mxu1 %v471_v34  ;;  %v752_v11 = vld [vmem:[#allocation4 + $0x1f0] sm:$0xff]  ;;  %v743_v12 = vld [vmem:[#allocation4 + $0x1a8] sm:$0xff]  ;;  %v749_v13 = vld [vmem:[#allocation4 + $0x1d8] sm:$0xff] }
  0x62   : > { %563 = vmatpush2.msra.mxu0 %v468_v25  ;;  %634 = vmatpush2.msra.mxu1 %v470_v36  ;;  %v742_v14 = vld [vmem:[#allocation4 + $0x1a0] sm:$0xff]  ;;  %v748_v15 = vld [vmem:[#allocation4 + $0x1d0] sm:$0xff]  ;;  %v739_v16 = vld [vmem:[#allocation4 + $0x188] sm:$0xff] }
  0x63   : > { %564 = vmatprep.subr.mxu0 %v465_v27  ;;  %635 = vmatprep.subr.mxu1 %v467_v38  ;;  %v745_v17 = vld [vmem:[#allocation4 + $0x1b8] sm:$0xff]  ;;  %v744_v18 = vld [vmem:[#allocation4 + $0x1b0] sm:$0xff]  ;;  %v738_v20 = vld [vmem:[#allocation4 + $0x180] sm:$0xff] }
  0x64   : > { %565 = vmatpush2.msra.mxu0 %v464_v29  ;;  %582 = vmatprep.mubr.f32.mxu0 %v366_v40  ;;  %v741_v19 = vld [vmem:[#allocation4 + $0x198] sm:$0xff]  ;;  %v740_v21 = vld [vmem:[#allocation4 + $0x190] sm:$0xff]  ;;  %v735_v22 = vld [vmem:[#allocation4 + $0x168] sm:$0xff] }
  0x65   : > { %566 = vmatprep.subr.mxu0 %v461_v31  ;;  %636 = vmatpush2.msra.mxu1 %v466_v42  ;;  %v737_v23 = vld [vmem:[#allocation4 + $0x178] sm:$0xff]  ;;  %v734_v24 = vld [vmem:[#allocation4 + $0x160] sm:$0xff]  ;;  %v736_v25 = vld [vmem:[#allocation4 + $0x170] sm:$0xff] }
  0x66   : > { %567 = vmatpush2.msra.mxu0 %v460_v33  ;;  %637 = vmatprep.subr.mxu1 %v463_v44  ;;  %v731_v26 = vld [vmem:[#allocation4 + $0x148] sm:$0xff]  ;;  %v733_v27 = vld [vmem:[#allocation4 + $0x158] sm:$0xff]  ;;  %v730_v28 = vld [vmem:[#allocation4 + $0x140] sm:$0xff] }
  0x67   : > { %568 = vmatprep.subr.mxu0 %v457_v35  ;;  %638 = vmatpush2.msra.mxu1 %v462_v46  ;;  %v732_v29 = vld [vmem:[#allocation4 + $0x150] sm:$0xff]  ;;  %v727_v30 = vld [vmem:[#allocation4 + $0x128] sm:$0xff]  ;;  %v729_v31 = vld [vmem:[#allocation4 + $0x138] sm:$0xff] }
  0x68   : > { %569 = vmatpush2.msra.mxu0 %v456_v37  ;;  %639 = vmatprep.subr.mxu1 %v459_v48  ;;  %v726_v32 = vld [vmem:[#allocation4 + $0x120] sm:$0xff]  ;;  %v728_v33 = vld [vmem:[#allocation4 + $0x130] sm:$0xff]  ;;  %v723_v34 = vld [vmem:[#allocation4 + $0x108] sm:$0xff] }
  0x69   : > { %570 = vmatprep.subr.mxu0 %v453_v39  ;;  %640 = vmatpush2.msra.mxu1 %v458_v50  ;;  %v725_v35 = vld [vmem:[#allocation4 + $0x118] sm:$0xff]  ;;  %v722_v36 = vld [vmem:[#allocation4 + $0x100] sm:$0xff]  ;;  %v724_v37 = vld [vmem:[#allocation4 + $0x110] sm:$0xff] }
  0x6a   : > { %571 = vmatpush2.msra.mxu0 %v452_v41  ;;  %641 = vmatprep.subr.mxu1 %v455_v52  ;;  %v719_v38 = vld [vmem:[#allocation4 + $0xe8] sm:$0xff]  ;;  %v721_v39 = vld [vmem:[#allocation4 + $0xf8] sm:$0xff]  ;;  %v720_v41 = vld [vmem:[#allocation4 + $0xf0] sm:$0xff] }
  0x6b   : > { %572 = vmatprep.subr.mxu0 %v449_v43  ;;  %642 = vmatpush2.msra.mxu1 %v454_v54  ;;  %v715_v42 = vld [vmem:[#allocation4 + $0xc8] sm:$0xff]  ;;  %v717_v43 = vld [vmem:[#allocation4 + $0xd8] sm:$0xff]  ;;  %v714_v44 = vld [vmem:[#allocation4 + $0xc0] sm:$0xff] }
  0x6c   : > { %573 = vmatpush2.msra.mxu0 %v448_v45  ;;  %643 = vmatprep.subr.mxu1 %v451_v56  ;;  %v716_v45 = vld [vmem:[#allocation4 + $0xd0] sm:$0xff]  ;;  %v711_v46 = vld [vmem:[#allocation4 + $0xa8] sm:$0xff]  ;;  %v710_v48 = vld [vmem:[#allocation4 + $0xa0] sm:$0xff] }
  0x6d   : > { %574 = vmatprep.subr.mxu0 %v445_v47  ;;  %644 = vmatpush2.msra.mxu1 %v450_v58  ;;  %v713_v47 = vld [vmem:[#allocation4 + $0xb8] sm:$0xff]  ;;  %v707_v50 = vld [vmem:[#allocation4 + $0x88] sm:$0xff]  ;;  %v706_v52 = vld [vmem:[#allocation4 + $0x80] sm:$0xff] }
  0x6e   : > { %575 = vmatpush2.msra.mxu0 %v444_v49  ;;  %645 = vmatprep.subr.mxu1 %v447_v60  ;;  %v712_v49 = vld [vmem:[#allocation4 + $0xb0] sm:$0xff]  ;;  %v703_v54 = vld [vmem:[#allocation4 + $0x68] sm:$0xff]  ;;  %v702_v56 = vld [vmem:[#allocation4 + $0x60] sm:$0xff] }
  0x6f   : > { %576 = vmatprep.subr.mxu0 %v441_v51  ;;  %646 = vmatpush2.msra.mxu1 %v446_v62  ;;  %v709_v51 = vld [vmem:[#allocation4 + $0x98] sm:$0xff]  ;;  %v699_v58 = vld [vmem:[#allocation4 + $0x48] sm:$0xff]  ;;  %v698_v60 = vld [vmem:[#allocation4 + $0x40] sm:$0xff] }
  0x70   : > { %577 = vmatpush2.msra.mxu0 %v440_v53  ;;  %647 = vmatprep.subr.mxu1 %v443_v0  ;;  %v708_v53 = vld [vmem:[#allocation4 + $0x90] sm:$0xff]  ;;  %v695_v62 = vld [vmem:[#allocation4 + $0x28] sm:$0xff]  ;;  %v694_v0 = vld [vmem:[#allocation4 + $0x20] sm:$0xff] }
  0x71   : > { %578 = vmatprep.subr.mxu0 %v437_v55  ;;  %648 = vmatpush2.msra.mxu1 %v442_v1  ;;  %v705_v55 = vld [vmem:[#allocation4 + $0x78] sm:$0xff]  ;;  %v696_v1 = vld [vmem:[#allocation4 + $0x30] sm:$0xff] }
  0x72   : > { %579 = vmatpush2.msra.mxu0 %v436_v57  ;;  %653 = vmatprep.mubr.f32.mxu1 %v366_v40  ;;  %v718_v40 = vld [vmem:[#allocation4 + $0xe0] sm:$0xff]  ;;  %v704_v57 = vld [vmem:[#allocation4 + $0x70] sm:$0xff] }
  0x73   : > { %580 = vmatprep.subr.mxu0 %v433_v59  ;;  %649 = vmatprep.subr.mxu1 %v439_v2  ;;  %v701_v59 = vld [vmem:[#allocation4 + $0x58] sm:$0xff]  ;;  %v691_v2 = vld [vmem:[#allocation4 + $0x8] sm:$0xff] }
  0x74   : > { %581 = vmatpush2.msra.mxu0 %v432_v61  ;;  %650 = vmatpush2.msra.mxu1 %v438_v4  ;;  %v700_v61 = vld [vmem:[#allocation4 + $0x50] sm:$0xff]  ;;  %v690_v4 = vld [vmem:[#allocation4] sm:$0xff] }
  0x75   : > { %583 = vmatmul.mubr.f32.vlgmr.msra.gmra.mxu0 %v365_v63  ;;  %840 = vmatprep.subr.mxu0 %v751_v3  ;;  %v693_v3 = vld [vmem:[#allocation4 + $0x18] sm:$0xff] }
  0x76   : > { %841 = vmatpush1.msra.mxu0 %v750_v5  ;;  %651 = vmatprep.subr.mxu1 %v435_v6  ;;  %v692_v5 = vld [vmem:[#allocation4 + $0x10] sm:$0xff]  ;;  %v815_v6 = vld [vmem:[#allocation4 + $0x3e8] sm:$0xff] }
  0x77   : > { %842 = vmatprep.subr.mxu0 %v747_v7  ;;  %652 = vmatpush2.msra.mxu1 %v434_v8  ;;  %v817_v7 = vld [vmem:[#allocation4 + $0x3f8] sm:$0xff]  ;;  %v814_v8 = vld [vmem:[#allocation4 + $0x3e0] sm:$0xff] }
  0x78   : > { %843 = vmatpush1.msra.mxu0 %v746_v9  ;;  %654 = vmatmul.mubr.f32.vlgmr.msra.gmra.mxu1 %v365_v63  ;;  %v697_v63 = vld [vmem:[#allocation4 + $0x38] sm:$0xff]  ;;  %v816_v9 = vld [vmem:[#allocation4 + $0x3f0] sm:$0xff] }
  0x79   : > { %911 = vmatprep.subr.mxu1 %v753_v10  ;;  %844 = vmatprep.subr.mxu0 %v743_v12  ;;  %v811_v10 = vld [vmem:[#allocation4 + $0x3c8] sm:$0xff]  ;;  %v810_v12 = vld [vmem:[#allocation4 + $0x3c0] sm:$0xff] }
  0x7a   : > { %912 = vmatpush1.msra.mxu1 %v752_v11  ;;  %845 = vmatpush1.msra.mxu0 %v742_v14  ;;  %v813_v11 = vld [vmem:[#allocation4 + $0x3d8] sm:$0xff]  ;;  %v807_v14 = vld [vmem:[#allocation4 + $0x3a8] sm:$0xff] }
  0x7b   : > { %913 = vmatprep.subr.mxu1 %v749_v13  ;;  %846 = vmatprep.subr.mxu0 %v739_v16  ;;  %v812_v13 = vld [vmem:[#allocation4 + $0x3d0] sm:$0xff]  ;;  %v806_v16 = vld [vmem:[#allocation4 + $0x3a0] sm:$0xff] }
  0x7c   : > { %914 = vmatpush1.msra.mxu1 %v748_v15  ;;  %847 = vmatpush1.msra.mxu0 %v738_v20  ;;  %v809_v15 = vld [vmem:[#allocation4 + $0x3b8] sm:$0xff]  ;;  %v802_v20 = vld [vmem:[#allocation4 + $0x380] sm:$0xff] }
  0x7d   : > { %915 = vmatprep.subr.mxu1 %v745_v17  ;;  %848 = vmatprep.subr.mxu0 %v735_v22  ;;  %v808_v17 = vld [vmem:[#allocation4 + $0x3b0] sm:$0xff]  ;;  %v799_v22 = vld [vmem:[#allocation4 + $0x368] sm:$0xff] }
  0x7e   : > { %916 = vmatpush1.msra.mxu1 %v744_v18  ;;  %849 = vmatpush1.msra.mxu0 %v734_v24  ;;  %v803_v18 = vld [vmem:[#allocation4 + $0x388] sm:$0xff]  ;;  %v798_v24 = vld [vmem:[#allocation4 + $0x360] sm:$0xff] }
  0x7f   : > { %917 = vmatprep.subr.mxu1 %v741_v19  ;;  %850 = vmatprep.subr.mxu0 %v731_v26  ;;  %v805_v19 = vld [vmem:[#allocation4 + $0x398] sm:$0xff]  ;;  %v795_v26 = vld [vmem:[#allocation4 + $0x348] sm:$0xff] }
  0x80   : > { %918 = vmatpush1.msra.mxu1 %v740_v21  ;;  %851 = vmatpush1.msra.mxu0 %v730_v28  ;;  %v804_v21 = vld [vmem:[#allocation4 + $0x390] sm:$0xff]  ;;  %v794_v28 = vld [vmem:[#allocation4 + $0x340] sm:$0xff] }
  0x81   : > { %919 = vmatprep.subr.mxu1 %v737_v23  ;;  %852 = vmatprep.subr.mxu0 %v727_v30  ;;  %v801_v23 = vld [vmem:[#allocation4 + $0x378] sm:$0xff]  ;;  %v791_v30 = vld [vmem:[#allocation4 + $0x328] sm:$0xff] }
  0x82   : > { %920 = vmatpush1.msra.mxu1 %v736_v25  ;;  %853 = vmatpush1.msra.mxu0 %v726_v32  ;;  %v800_v25 = vld [vmem:[#allocation4 + $0x370] sm:$0xff]  ;;  %v790_v32 = vld [vmem:[#allocation4 + $0x320] sm:$0xff] }
  0x83   : > { %921 = vmatprep.subr.mxu1 %v733_v27  ;;  %854 = vmatprep.subr.mxu0 %v723_v34  ;;  %v797_v27 = vld [vmem:[#allocation4 + $0x358] sm:$0xff]  ;;  %v787_v34 = vld [vmem:[#allocation4 + $0x308] sm:$0xff] }
  0x84   : > { %922 = vmatpush1.msra.mxu1 %v732_v29  ;;  %855 = vmatpush1.msra.mxu0 %v722_v36  ;;  %v796_v29 = vld [vmem:[#allocation4 + $0x350] sm:$0xff]  ;;  %v786_v36 = vld [vmem:[#allocation4 + $0x300] sm:$0xff] }
  0x85   : > { %923 = vmatprep.subr.mxu1 %v729_v31  ;;  %856 = vmatprep.subr.mxu0 %v719_v38  ;;  %v793_v31 = vld [vmem:[#allocation4 + $0x338] sm:$0xff]  ;;  %v783_v38 = vld [vmem:[#allocation4 + $0x2e8] sm:$0xff] }
  0x86   : > { %924 = vmatpush1.msra.mxu1 %v728_v33  ;;  %857 = vmatpush1.msra.mxu0 %v718_v40  ;;  %v792_v33 = vld [vmem:[#allocation4 + $0x330] sm:$0xff]  ;;  %v782_v40 = vld [vmem:[#allocation4 + $0x2e0] sm:$0xff] }
  0x87   : > { %925 = vmatprep.subr.mxu1 %v725_v35  ;;  %858 = vmatprep.subr.mxu0 %v715_v42  ;;  %v789_v35 = vld [vmem:[#allocation4 + $0x318] sm:$0xff]  ;;  %v779_v42 = vld [vmem:[#allocation4 + $0x2c8] sm:$0xff] }
  0x88   : > { %926 = vmatpush1.msra.mxu1 %v724_v37  ;;  %859 = vmatpush1.msra.mxu0 %v714_v44  ;;  %v788_v37 = vld [vmem:[#allocation4 + $0x310] sm:$0xff]  ;;  %v778_v44 = vld [vmem:[#allocation4 + $0x2c0] sm:$0xff] }
  0x89   : > { %927 = vmatprep.subr.mxu1 %v721_v39  ;;  %860 = vmatprep.subr.mxu0 %v711_v46  ;;  %v785_v39 = vld [vmem:[#allocation4 + $0x2f8] sm:$0xff]  ;;  %v775_v46 = vld [vmem:[#allocation4 + $0x2a8] sm:$0xff] }
  0x8a   : > { %928 = vmatpush1.msra.mxu1 %v720_v41  ;;  %861 = vmatpush1.msra.mxu0 %v710_v48  ;;  %v784_v41 = vld [vmem:[#allocation4 + $0x2f0] sm:$0xff]  ;;  %v774_v48 = vld [vmem:[#allocation4 + $0x2a0] sm:$0xff] }
  0x8b   : > { %929 = vmatprep.subr.mxu1 %v717_v43  ;;  %862 = vmatprep.subr.mxu0 %v707_v50  ;;  %v781_v43 = vld [vmem:[#allocation4 + $0x2d8] sm:$0xff]  ;;  %v771_v50 = vld [vmem:[#allocation4 + $0x288] sm:$0xff] }
  0x8c   : > { %930 = vmatpush1.msra.mxu1 %v716_v45  ;;  %863 = vmatpush1.msra.mxu0 %v706_v52  ;;  %v780_v45 = vld [vmem:[#allocation4 + $0x2d0] sm:$0xff]  ;;  %v770_v52 = vld [vmem:[#allocation4 + $0x280] sm:$0xff] }
  0x8d   : > { %931 = vmatprep.subr.mxu1 %v713_v47  ;;  %864 = vmatprep.subr.mxu0 %v703_v54  ;;  %v777_v47 = vld [vmem:[#allocation4 + $0x2b8] sm:$0xff]  ;;  %v767_v54 = vld [vmem:[#allocation4 + $0x268] sm:$0xff] }
  0x8e   : > { %932 = vmatpush1.msra.mxu1 %v712_v49  ;;  %865 = vmatpush1.msra.mxu0 %v702_v56  ;;  %v776_v49 = vld [vmem:[#allocation4 + $0x2b0] sm:$0xff]  ;;  %v766_v56 = vld [vmem:[#allocation4 + $0x260] sm:$0xff] }
  0x8f   : > { %933 = vmatprep.subr.mxu1 %v709_v51  ;;  %866 = vmatprep.subr.mxu0 %v699_v58  ;;  %v773_v51 = vld [vmem:[#allocation4 + $0x298] sm:$0xff]  ;;  %v763_v58 = vld [vmem:[#allocation4 + $0x248] sm:$0xff] }
  0x90   : > { %934 = vmatpush1.msra.mxu1 %v708_v53  ;;  %867 = vmatpush1.msra.mxu0 %v698_v60  ;;  %v772_v53 = vld [vmem:[#allocation4 + $0x290] sm:$0xff]  ;;  %v762_v60 = vld [vmem:[#allocation4 + $0x240] sm:$0xff] }
  0x91   : > { %935 = vmatprep.subr.mxu1 %v705_v55  ;;  %868 = vmatprep.subr.mxu0 %v695_v62  ;;  %v769_v55 = vld [vmem:[#allocation4 + $0x278] sm:$0xff]  ;;  %v759_v62 = vld [vmem:[#allocation4 + $0x228] sm:$0xff] }
  0x92   : > { %936 = vmatpush1.msra.mxu1 %v704_v57  ;;  %869 = vmatpush1.msra.mxu0 %v694_v0  ;;  %v768_v57 = vld [vmem:[#allocation4 + $0x270] sm:$0xff]  ;;  %v758_v0 = vld [vmem:[#allocation4 + $0x220] sm:$0xff] }
  0x93   : > { %937 = vmatprep.subr.mxu1 %v701_v59  ;;  %870 = vmatprep.subr.mxu0 %v691_v2  ;;  %v765_v59 = vld [vmem:[#allocation4 + $0x258] sm:$0xff]  ;;  %v755_v2 = vld [vmem:[#allocation4 + $0x208] sm:$0xff] }
  0x94   : > { %938 = vmatpush1.msra.mxu1 %v700_v61  ;;  %871 = vmatpush1.msra.mxu0 %v690_v4  ;;  %v764_v61 = vld [vmem:[#allocation4 + $0x250] sm:$0xff]  ;;  %v754_v4 = vld [vmem:[#allocation4 + $0x200] sm:$0xff] }
  0x95   : > { %939 = vmatprep.subr.mxu1 %v697_v63  ;;  %872 = vmatprep.subr.mxu0 %v815_v6  ;;  %v761_v63 = vld [vmem:[#allocation4 + $0x238] sm:$0xff]  ;;  %v756_v6 = vld [vmem:[#allocation4 + $0x210] sm:$0xff] }
  0x96   : > { %940 = vmatpush1.msra.mxu1 %v696_v1  ;;  %873 = vmatpush2.msra.mxu0 %v814_v8  ;;  %v760_v1 = vld [vmem:[#allocation4 + $0x230] sm:$0xff] }
  0x97   : > { %941 = vmatprep.subr.mxu1 %v693_v3  ;;  %874 = vmatprep.subr.mxu0 %v811_v10  ;;  %v757_v3 = vld [vmem:[#allocation4 + $0x218] sm:$0xff]  ;;  %v496_v10 = vld [vmem:[%s1441_s5] sm:$0xf] }
  0x98   : > { %942 = vmatpush1.msra.mxu1 %v692_v5  ;;  %875 = vmatpush2.msra.mxu0 %v810_v12  ;;  %v1111_v5 = vld [vmem:[%s1444_s8 + $0x8] sm:$0xff] }
  0x99   : > { %943 = vmatprep.subr.mxu1 %v817_v7  ;;  %876 = vmatprep.subr.mxu0 %v807_v14  ;;  %v498_v7 = vlaneseq }
  0x9a   : > { %944 = vmatpush2.msra.mxu1 %v816_v9  ;;  %877 = vmatpush2.msra.mxu0 %v806_v16 }
  0x9b   : > { %945 = vmatprep.subr.mxu1 %v813_v11  ;;  %878 = vmatprep.subr.mxu0 %v803_v18  ;;  %v1402_v8 = vshrl.u32 %v498_v7, 7 }
  0x9c   : > { %946 = vmatpush2.msra.mxu1 %v812_v13  ;;  %879 = vmatpush2.msra.mxu0 %v802_v20 }
  0x9d   : > { %947 = vmatprep.subr.mxu1 %v809_v15  ;;  %880 = vmatprep.subr.mxu0 %v799_v22  ;;  %v500_v9 = vsub.s32 0, %v1402_v8  ;;  %v504_v11 = vsub.s32 1, %v1402_v8  ;;  %v508_v22 = vsub.s32 2, %v1402_v8 }
  0x9e   : > { %948 = vmatpush2.msra.mxu1 %v808_v17  ;;  %881 = vmatpush2.msra.mxu0 %v798_v24 }
  0x9f   : > { %949 = vmatprep.subr.mxu1 %v805_v19  ;;  %882 = vmatprep.subr.mxu0 %v795_v26  ;;  %v501_v12 = vrot.slane %v496_v10, %v500_v9  ;;  %v505_v13 = vrot.slane %v496_v10, %v504_v11  ;;  %v512_v19 = vsub.s32 3, %v1402_v8 }
  0xa0   : > { %950 = vmatpush2.msra.mxu1 %v804_v21  ;;  %883 = vmatpush2.msra.mxu0 %v794_v28 }
  0xa1   : > { %951 = vmatprep.subr.mxu1 %v801_v23  ;;  %884 = vmatprep.subr.mxu0 %v791_v30  ;;  %v513_v23 = vrot.slane %v496_v10, %v512_v19 }
  0xa2   : > { %952 = vmatpush2.msra.mxu1 %v800_v25  ;;  %885 = vmatpush2.msra.mxu0 %v790_v32  ;;  %v509_v25 = vrot.slane %v496_v10, %v508_v22 }
  0xa3   : > { %953 = vmatprep.subr.mxu1 %v797_v27  ;;  %886 = vmatprep.subr.mxu0 %v787_v34 }
  0xa4   : > { %954 = vmatpush2.msra.mxu1 %v796_v29  ;;  %887 = vmatpush2.msra.mxu0 %v786_v36  ;;  %v367_v36 = vld [vmem:[%s1445_s9] sm:$0xff] }
  0xa5   : > { %955 = vmatprep.subr.mxu1 %v793_v31  ;;  %888 = vmatprep.subr.mxu0 %v783_v38 }
  0xa6   : > { %956 = vmatpush2.msra.mxu1 %v792_v33  ;;  %889 = vmatpush2.msra.mxu0 %v782_v40 }
  0xa7   : > { %957 = vmatprep.subr.mxu1 %v789_v35  ;;  %890 = vmatprep.subr.mxu0 %v779_v42 }
  0xa8   : > { %958 = vmatpush2.msra.mxu1 %v788_v37  ;;  %891 = vmatpush2.msra.mxu0 %v778_v44 }
  0xa9   : > { %959 = vmatprep.subr.mxu1 %v785_v39  ;;  %892 = vmatprep.subr.mxu0 %v775_v46 }
  0xaa   : > { %960 = vmatpush2.msra.mxu1 %v784_v41  ;;  %893 = vmatpush2.msra.mxu0 %v774_v48 }
  0xab   : > { %961 = vmatprep.subr.mxu1 %v781_v43  ;;  %894 = vmatprep.subr.mxu0 %v771_v50 }
  0xac   : > { %962 = vmatpush2.msra.mxu1 %v780_v45  ;;  %895 = vmatpush2.msra.mxu0 %v770_v52  ;;  %v818_v45 = vld [vmem:[%s1442_s6] sm:$0xf] }
  0xad   : > { %963 = vmatprep.subr.mxu1 %v777_v47  ;;  %896 = vmatprep.subr.mxu0 %v767_v54  ;;  %v823_v46 = vrot.slane %v818_v45, %v500_v9  ;;  %v827_v47 = vrot.slane %v818_v45, %v504_v11 }
  0xae   : > { %964 = vmatpush2.msra.mxu1 %v776_v49  ;;  %897 = vmatpush2.msra.mxu0 %v766_v56 }
  0xaf   : > { %965 = vmatprep.subr.mxu1 %v773_v51  ;;  %898 = vmatprep.subr.mxu0 %v763_v58  ;;  %v831_v58 = vrot.slane %v818_v45, %v508_v22 }
  0xb0   : > { %966 = vmatpush2.msra.mxu1 %v772_v53  ;;  %899 = vmatpush2.msra.mxu0 %v762_v60 }
  0xb1   : > { %967 = vmatprep.subr.mxu1 %v769_v55  ;;  %900 = vmatprep.subr.mxu0 %v759_v62  ;;  %v835_v55 = vrot.slane %v818_v45, %v512_v19 }
  0xb2   : > { %968 = vmatpush2.msra.mxu1 %v768_v57  ;;  %901 = vmatpush2.msra.mxu0 %v758_v0 }
  0xb3   : > { %969 = vmatprep.subr.mxu1 %v765_v59  ;;  %902 = vmatprep.subr.mxu0 %v755_v2 }
  0xb4   : > { %970 = vmatpush2.msra.mxu1 %v764_v61  ;;  %903 = vmatpush2.msra.mxu0 %v754_v4 }
  0xb5   : > { %971 = vmatprep.subr.mxu1 %v761_v63  ;;  %904 = vmatprep.mubr.f32.mxu0 %v1111_v5 }
  0xb6   : > { %972 = vmatpush2.msra.mxu1 %v760_v1  ;;  %975 = vmatprep.mubr.f32.mxu1 %v1111_v5 }
  0xb7   : > { %973 = vmatprep.subr.mxu1 %v757_v3  ;;  %v1112_v3 = vld [vmem:[%s1445_s9 + $0x8] sm:$0xff] }
  0xb8   : > { %974 = vmatpush2.msra.mxu1 %v756_v6 }
 0x135   : > { %v584_v14 = vpop.f32.mrf.mxu0 }
 0x136   : > { %v585_v15 = vadd.f32 %v584_v14, %v501_v12 }
 0x137   : > { %v586_v16 = vpop.f32.mrf.mxu0 }
 0x138   : > { %v1108_v17 = vmul.f32 -1.442695, %v585_v15  ;;  %v587_v18 = vadd.f32 %v586_v16, %v505_v13  ;;  %v655_v21 = vpop.f32.mrf.mxu1 }
 0x139   : > { %v656_v27 = vadd.f32 %v655_v21, %v509_v25 }
 0x13a   : > { %1151 = vpow2.f32 %v1108_v17  ;;  %v1109_v20 = vmul.f32 -1.442695, %v587_v18  ;;  %v657_v24 = vpop.f32.mrf.mxu1 }
 0x13b   : > { %v658_v26 = vadd.f32 %v657_v24, %v513_v23 }
 0x13c   : > { %1153 = vpow2.f32 %v1109_v20 }
 0x13d   : > { %v1110_v28 = vmul.f32 -1.442695, %v658_v26  ;;  %1155 = vtanh.f32 %v656_v27 }
 0x13f   : > { %1157 = vpow2.f32 %v1110_v28 }
 0x147   : > { %v1152_v29 = vpop.eup %1151 }
 0x148   : > { %v663_v30 = vadd.f32 1.0, %v1152_v29 }
 0x149   : > { %v1154_v31 = vpop.eup %1153 }
 0x14a   : > { %1159 = vrcp.f32 %v663_v30  ;;  %v669_v32 = vadd.f32 1.0, %v1154_v31  ;;  %v1156_v33 = vpop.eup %1155 }
 0x14c   : > { %1161 = vrcp.f32 %v669_v32  ;;  %v1158_v34 = vpop.eup %1157 }
 0x14d   : > { %v676_v38 = vadd.f32 1.0, %v1158_v34 }
 0x14f   : > { %1163 = vrcp.f32 %v676_v38 }
 0x157   : > { %v1160_v35 = vpop.eup %1159 }
 0x158   : > { %v680_v40 = vmul.f32 %v1160_v35, %v1156_v33 }
 0x159   : > { %v1162_v37 = vpop.eup %1161 }
 0x15a   : > { %v679_v39 = vmul.f32 %v1162_v37, %v367_v36 }
 0x15c   : > { %v681_v41 = vadd.f32 %v680_v40, %v679_v39  ;;  %v1164_v42 = vpop.eup %1163 }
 0x15e   : > { %1165 = vtanh.f32 %v681_v41  ;;  %685 = vst [vmem:[%s1445_s9] sm:$0xff] %v681_v41 }
 0x16b   : > { %v1166_v43 = vpop.eup %1165 }
 0x16c   : > { %v683_v44 = vmul.f32 %v1166_v43, %v1164_v42 }
 0x16e   : > { %684 = vst [vmem:[%s1444_s8] sm:$0xff] %v683_v44  ;;  %905 = vmatmul.mubr.f32.vlgmr.msra.gmra.mxu0 %v683_v44  ;;  %976 = vmatmul.mubr.f32.vlgmr.msra.gmra.mxu1 %v683_v44 }
 0x22e   : > { %v906_v48 = vpop.f32.mrf.mxu0  ;;  %v977_v53 = vpop.f32.mrf.mxu1 }
 0x22f   : > { %v907_v49 = vadd.f32 %v906_v48, %v823_v46  ;;  %v978_v61 = vadd.f32 %v977_v53, %v831_v58 }
 0x230   : > { %v908_v50 = vpop.f32.mrf.mxu0  ;;  %v979_v56 = vpop.f32.mrf.mxu1 }
 0x231   : > { %v1113_v51 = vmul.f32 -1.442695, %v907_v49  ;;  %v909_v52 = vadd.f32 %v908_v50, %v827_v47  ;;  %v980_v57 = vadd.f32 %v979_v56, %v835_v55 }
 0x233   : > { %1167 = vpow2.f32 %v1113_v51  ;;  %v1114_v54 = vmul.f32 -1.442695, %v909_v52  ;;  %v1115_v59 = vmul.f32 -1.442695, %v980_v57 }
 0x235   : > { %1169 = vpow2.f32 %v1114_v54 }
 0x236   : > { %1171 = vpow2.f32 %v1115_v59 }
 0x240   : > { %v1168_v60 = vpop.eup %1167 }
 0x241   : > { %v985_v62 = vadd.f32 1.0, %v1168_v60 }
 0x242   : > { %v1170_v63 = vpop.eup %1169 }
 0x243   : > { %1173 = vrcp.f32 %v985_v62  ;;  %v991_v0 = vadd.f32 1.0, %v1170_v63  ;;  %v1172_v1 = vpop.eup %1171 }
 0x244   : > { %1175 = vtanh.f32 %v978_v61  ;;  %v998_v6 = vadd.f32 1.0, %v1172_v1 }
 0x245   : > { %1177 = vrcp.f32 %v991_v0 }
 0x246   : > { %1179 = vrcp.f32 %v998_v6 }
 0x250   : > { %v1174_v2 = vpop.eup %1173 }
 0x251   : > { %v1176_v4 = vpop.eup %1175 }
 0x252   : > { %v1178_v5 = vpop.eup %1177  ;;  %v1002_v7 = vmul.f32 %v1176_v4, %v1174_v2 }
 0x253   : > { %v1001_v8 = vmul.f32 %v1178_v5, %v1112_v3  ;;  %v1180_v10 = vpop.eup %1179 }
 0x255   : > { %v1003_v9 = vadd.f32 %v1002_v7, %v1001_v8 }
 0x257   : > { %1181 = vtanh.f32 %v1003_v9  ;;  %1117 = vst [vmem:[%s1445_s9 + $0x8] sm:$0xff] %v1003_v9 }
 0x264   : > { %v1182_v11 = vpop.eup %1181 }
 0x265   : > { %v1005_v12 = vmul.f32 %v1182_v11, %v1180_v10 }
 0x267   : > { %1116 = vst [vmem:[%s1444_s8 + $0x8] sm:$0xff] %v1005_v12  ;;  %1008 = vst [vmem:[%s1367_s13] sm:$0xff] %v1005_v12 }
 0x268 PF: > { %s22_s30 = sadd.s32 1, %s1249_s30  }
 0x269   : > { %p19_p4 = scmp.ge.s32.totalorder %s22_s30, 10  }
 0x26b   :  { %21 = sbr.rel (!%p19_p4) target bundleno = 2 (0x2), region = 109 }
 0x270   :  { %1040 = vsyncpa [#allocation3], 1 }
 0x271   :  { %1042 = vsyncpa [#allocation3 + $0x1], 1 }
 0x272   :  { %1043 = vsyncpa [#allocation5], 1 }

</bundles_post_ra>
